<compile_context>
chip_gen: v5e
topology: v5e:2x2
jax: 0.10.0
libtpu: 0.0.40
codegen_flags: <defaults>
</compile_context>

<pallas_src>
import jax
import jax.numpy as jnp
from jax import lax
from jax.experimental import pallas as pl
from jax.experimental.pallas import tpu as pltpu


def _round_up(v, m):
    return ((v + m - 1) // m) * m


def _make_rfc_kernel(chunk, n_chunks):
    """Builds the fused kernel body; `chunk` rows are processed per MXU push."""

    def _chunk_compute(x, w1t, w2t, op_dtype):
        # fc1 + residual: MXU accumulates in f32; residual add stays in f32.
        h = x.astype(jnp.float32) + jnp.dot(
            x, w1t, preferred_element_type=jnp.float32)
        # fc2 operand back in the operand dtype (bf16 MXU fast path when bf16).
        out = h + jnp.dot(
            h.astype(op_dtype), w2t, preferred_element_type=jnp.float32)
        return out

    def rfc_kernel(x_ref, w1t_ref, w2t_ref, o_ref):
        # Hoist the resident-weight loads out of the chunk loop (done once).
        w1t = w1t_ref[...]
        w2t = w2t_ref[...]
        if n_chunks == 1:
            o_ref[...] = _chunk_compute(
                x_ref[...], w1t, w2t, x_ref.dtype).astype(o_ref.dtype)
        else:
            def body(c, carry):
                r0 = pl.multiple_of(c * chunk, chunk)
                out = _chunk_compute(
                    x_ref[pl.ds(r0, chunk), :], w1t, w2t, x_ref.dtype)
                o_ref[pl.ds(r0, chunk), :] = out.astype(o_ref.dtype)
                return carry
            # Unrolled so the LLO scheduler interleaves chunk i's VPU epilogue
            # with chunk i+1's MXU work.
            lax.fori_loop(0, n_chunks, body, 0, unroll=True)

    return rfc_kernel


def rfc_forward(x, w1t, w2t, *, tm=512):
    """Fused residual-FC forward.

    x:   [B, D]
    w1t: [D, D]  fc1 weight pre-transposed to (in, out) layout (i.e. W1.T)
    w2t: [D, D]  fc2 weight pre-transposed to (in, out) layout (i.e. W2.T)
    """
    B, D = x.shape
    assert w1t.shape == (D, D) and w2t.shape == (D, D)

    # Sublane alignment for the row tile: 8 rows for 4-byte dtypes, 16 for bf16.
    sub = 16 if x.dtype == jnp.bfloat16 else 8
    b_aligned = _round_up(B, sub)

    # Clamp the tile to the (sublane-aligned) batch, keep it sublane-aligned.
    tm = min(tm, b_aligned)
    tm = max(sub, (tm // sub) * sub)
    # v7x megacore: guarantee >= 2 grid steps when there is enough work so the
    # "parallel" grid axis can be sharded across both TensorCores.
    if pl.cdiv(B, tm) < 2 and b_aligned >= 2 * sub:
        tm = max(sub, _round_up(pl.cdiv(B, 2), sub))
    grid = (pl.cdiv(B, tm),)

    # In-kernel row sub-tiling: 4 chunks if each chunk still has >=128 rows,
    # else 2, else no sub-tiling (tiny batches).
    if tm % 4 == 0 and (tm // 4) % sub == 0 and tm // 4 >= 128:
        n_chunks = 4
    elif tm % 2 == 0 and (tm // 2) % sub == 0 and tm // 2 >= 128:
        n_chunks = 2
    else:
        n_chunks = 1
    chunk = tm // n_chunks

    # VMEM budget: resident weights (plus slack for a compiler-materialized
    # copy of the hoisted loads) + double-buffered (tm, D) x/out tiles + f32
    # intermediates inside the body.
    w_bytes = w1t.dtype.itemsize
    x_bytes = x.dtype.itemsize
    est = (2 * D * D * w_bytes            # resident weights (single copy each)
           + 2 * D * D * w_bytes          # slack for hoisted-load copies
           + 2 * 2 * tm * D * x_bytes     # double-buffered x and out tiles
           + 2 * tm * D * 4)              # f32 intermediates (h, out)

    # Generation-aware VMEM cap with headroom (v7x: 64 MiB/TC, v5e/v6e: 128 MiB).
    try:
        vmem_cap = int(pltpu.get_tpu_info().vmem_capacity_bytes)
    except Exception:  # pragma: no cover - conservative fallback
        vmem_cap = 64 * 1024 * 1024
    vmem_limit = int(min(max(est + est // 2, 32 * 1024 * 1024),
                         vmem_cap - vmem_cap // 8))
    if est > vmem_limit:
        # TODO(synk): weight-column tiling path for very large D (see header).
        raise NotImplementedError(
            f"D={D} too large for the resident-weight path on this chip "
            f"(needs ~{est >> 20} MiB VMEM, budget {vmem_limit >> 20} MiB).")

    cost = pl.CostEstimate(
        flops=4 * B * D * D + 2 * B * D,
        transcendentals=0,
        bytes_accessed=2 * B * D * x_bytes + 2 * D * D * w_bytes,
    )

    grid_spec = pltpu.PrefetchScalarGridSpec(
        num_scalar_prefetch=0,
        grid=grid,
        in_specs=[
            # x row tile, streamed / double-buffered across the grid. The
            # ragged last block (B % tm != 0) is masked by Pallas; rows are
            # independent so unspecified padding rows never contaminate output.
            pl.BlockSpec((tm, D), lambda i: (i, 0)),
            # Constant DxD weights: whole-array resident in VMEM, single copy
            # (no double-buffering of an unchanging block).
            pl.BlockSpec(memory_space=pltpu.MemorySpace.VMEM),
            pl.BlockSpec(memory_space=pltpu.MemorySpace.VMEM),
        ],
        out_specs=pl.BlockSpec((tm, D), lambda i: (i, 0)),
    )

    return pl.pallas_call(
        _make_rfc_kernel(chunk, n_chunks),
        out_shape=jax.ShapeDtypeStruct((B, D), x.dtype),
        grid_spec=grid_spec,
        compiler_params=pltpu.CompilerParams(
            dimension_semantics=("parallel",),   # megacore-shardable on v7x
            vmem_limit_bytes=vmem_limit,
        ),
        cost_estimate=cost,
    )(x, w1t, w2t)


def rfc_reference(x, w1, w2):
    # Pure-JAX reference in PyTorch nn.Linear ([out, in]) weight layout.
    h = x + x @ w1.T
    return h + h @ w2.T


if __name__ == "__main__":
    D = 256  # small dim consistent with the module (module default is 1024)
    key = jax.random.PRNGKey(0)
    kx, k1, k2, kx2, kx3 = jax.random.split(key, 5)

    x = jax.random.normal(kx, (16, D), dtype=jnp.float32)
    # Deterministic, non-trivial weight init (the module's own init is zeros).
    w1 = 0.02 * jax.random.normal(k1, (D, D), dtype=jnp.float32)
    w2 = 0.02 * jax.random.normal(k2, (D, D), dtype=jnp.float32)

    # Transposes are hoisted out of the forward path: done once here
    # ("parameter creation"), not per call.
    w1t, w2t = w1.T, w2.T

    # --- f32 operands: tight tolerance --------------------------------------
    ref = rfc_reference(x, w1, w2)
    out_f32 = jax.block_until_ready(rfc_forward(x, w1t, w2t))
    assert out_f32.shape == x.shape
    assert jnp.allclose(out_f32, ref, atol=1e-4, rtol=1e-4), "f32 mismatch"

    # --- bf16 operands (MXU fast path), f32 accumulation inside the kernel ---
    out_bf16 = jax.block_until_ready(
        rfc_forward(x.astype(jnp.bfloat16),
                    w1t.astype(jnp.bfloat16),
                    w2t.astype(jnp.bfloat16)))
    assert out_bf16.shape == x.shape
    assert jnp.allclose(out_bf16.astype(jnp.float32), ref,
                        atol=5e-2, rtol=5e-2), "bf16 mismatch"

    # --- the module's actual init (zero weights) => forward is identity -----
    z = jnp.zeros((D, D), jnp.float32)
    out_id = jax.block_until_ready(rfc_forward(x, z, z))
    assert jnp.allclose(out_id, x), "zero-weight forward must be identity"

    # --- ragged batch (B % tm != 0): exercises Pallas partial-block masking --
    x_rag = jax.random.normal(kx2, (20, D), dtype=jnp.float32)
    out_rag = jax.block_until_ready(rfc_forward(x_rag, w1t, w2t))
    assert out_rag.shape == x_rag.shape
    assert jnp.allclose(out_rag, rfc_reference(x_rag, w1, w2),
                        atol=1e-4, rtol=1e-4), "ragged-B mismatch"

    # --- larger batch: exercises the unrolled in-kernel chunk loop ----------
    x_big = jax.random.normal(kx3, (512, D), dtype=jnp.float32)
    out_big = jax.block_until_ready(rfc_forward(x_big, w1t, w2t))
    assert out_big.shape == x_big.shape
    assert jnp.allclose(out_big, rfc_reference(x_big, w1, w2),
                        atol=1e-4, rtol=1e-4), "chunked-path mismatch"

    print("KERNEL_OK")
</pallas_src>

<mosaic_0001>
module attributes {stable_mosaic.version = 11 : i64} {
  func.func @rfc_kernel(%arg0: i32, %arg1: memref<8x256xf32, #tpu.memory_space<vmem>>, %arg2: memref<256x256xf32, #tpu.memory_space<vmem>>, %arg3: memref<256x256xf32, #tpu.memory_space<vmem>>, %arg4: memref<8x256xf32, #tpu.memory_space<vmem>>) attributes {dimension_semantics = [#tpu.dimension_semantics<parallel>], iteration_bounds = array<i64: 2>, scalar_prefetch = 0 : i64, scratch_operands = 0 : i64, tpu.core_type = #tpu.core_type<tc>, window_params = [{transform_indices = @transform_0, window_bounds = array<i64: 8, 256>}, {pipeline_mode = #tpu.pipeline_mode<synchronous>, transform_indices = @transform_1, window_bounds = array<i64: 256, 256>}, {pipeline_mode = #tpu.pipeline_mode<synchronous>, transform_indices = @transform_2, window_bounds = array<i64: 256, 256>}, {transform_indices = @transform_3, window_bounds = array<i64: 8, 256>}]} {
    %c0 = arith.constant 0 : index
    %c0_0 = arith.constant 0 : index
    %0 = vector.load %arg2[%c0, %c0_0] : memref<256x256xf32, #tpu.memory_space<vmem>>, vector<256x256xf32>
    %c0_1 = arith.constant 0 : index
    %c0_2 = arith.constant 0 : index
    %1 = vector.load %arg3[%c0_1, %c0_2] : memref<256x256xf32, #tpu.memory_space<vmem>>, vector<256x256xf32>
    %c0_3 = arith.constant 0 : index
    %c0_4 = arith.constant 0 : index
    %2 = vector.load %arg1[%c0_3, %c0_4] : memref<8x256xf32, #tpu.memory_space<vmem>>, vector<8x256xf32>
    %cst = arith.constant dense<0.000000e+00> : vector<8x256xf32>
    %3 = tpu.matmul %2, %0, %cst {dimension_numbers = #tpu.dot_dimension_numbers<[1], [0], [0], [1], [0, 0, 1, 1], [], []>} : vector<8x256xf32>, vector<256x256xf32>, vector<8x256xf32> -> vector<8x256xf32>
    %4 = arith.addf %2, %3 : vector<8x256xf32>
    %cst_5 = arith.constant dense<0.000000e+00> : vector<8x256xf32>
    %5 = tpu.matmul %4, %1, %cst_5 {dimension_numbers = #tpu.dot_dimension_numbers<[1], [0], [0], [1], [0, 0, 1, 1], [], []>} : vector<8x256xf32>, vector<256x256xf32>, vector<8x256xf32> -> vector<8x256xf32>
    %6 = arith.addf %4, %5 : vector<8x256xf32>
    %c0_6 = arith.constant 0 : index
    %c0_7 = arith.constant 0 : index
    %7 = vector.load %arg4[%c0_6, %c0_7] : memref<8x256xf32, #tpu.memory_space<vmem>>, vector<8x256xf32>
    tpu.vector_store %arg4[%c0_6, %c0_7], %6 {strides = array<i32>} : memref<8x256xf32, #tpu.memory_space<vmem>>, vector<8x256xf32>,
    return
  }
  func.func @transform_0(%arg0: i32) -> (i32, i32) {
    %c0_i32 = arith.constant 0 : i32
    %c0_i32_0 = arith.constant 0 : i32
    return %arg0, %c0_i32 : i32, i32
  }
  func.func @transform_1(%arg0: i32) -> (i32, i32) {
    %c0_i32 = arith.constant 0 : i32
    %c0_i32_0 = arith.constant 0 : i32
    %c0_i32_1 = arith.constant 0 : i32
    return %c0_i32, %c0_i32_0 : i32, i32
  }
  func.func @transform_2(%arg0: i32) -> (i32, i32) {
    %c0_i32 = arith.constant 0 : i32
    %c0_i32_0 = arith.constant 0 : i32
    %c0_i32_1 = arith.constant 0 : i32
    return %c0_i32, %c0_i32_0 : i32, i32
  }
  func.func @transform_3(%arg0: i32) -> (i32, i32) {
    %c0_i32 = arith.constant 0 : i32
    %c0_i32_0 = arith.constant 0 : i32
    return %arg0, %c0_i32 : i32, i32
  }
}

</mosaic_0001>

<bundles_post_ra>
// kernel: tpu_custom_call.1
= control target key start
LH: loop header
LB: loop body
LE: loop exit
PB: predicated region body
PF: predicated region fallthrough
CT: control target
= control target key end

     0   :  { %8 = vsyncpa [#allocation3], 0  ;;  %s1062_s0 = inlined_call_operand.hbm [shape: f32[16,256], index: 0, kind: input, shape index: {}]   ;;  %s1063_s1 = inlined_call_operand.hbm [shape: f32[256,256], index: 1, kind: input, shape index: {}]   ;;  %s1064_s2 = inlined_call_operand.hbm [shape: f32[256,256], index: 2, kind: input, shape index: {}]   ;;  %s1065_s3 = inlined_call_operand.hbm [shape: f32[16,256], index: 3, kind: output, shape index: {}]  }
   0x1   :  { %10 = vsyncpa [#allocation3 + $0x1], 0 }
   0x2   :  { %11 = vsyncpa [#allocation6], 0 }
   0x3   :  { %12 = vsyncpa [#allocation4], 0 }
   0x4   :  { %14 = vsyncpa [#allocation4 + $0x1], 0  ;;  %s899_s12 = smov 0   ;;  %s901_s13 = smov 0  }
   0x5   :  { %s903_s14 = smov 0   ;;  %s905_s15 = smov 0  }
   0x6 LB: > { %s130_s18 = sshll.u32 %s1063_s1, 4  ;;  %s923_s19 = sadd.s32 4294967295, %s873_s15   ;;  %s873_s15 = sphi %s905_s15, %s1076_s15   ;;  %s869_s14 = sphi %s903_s14, %s1075_s14   ;;  %s865_s13 = sphi %s901_s13, %s1074_s13   ;;  %s861_s12 = sphi %s899_s12, %s1073_s12   ;;  %s131_s18 = int_to_ptr.hbm [resolvable:$true] %s130_s18 }
   0x7   : > { %p625_p0 = scmp.ge.s32.totalorder %s873_s15, 1  ;;  %p41_p1 = scmp.eq.s32.totalorder %s923_s19, 0 }
   0x8   : > { %p119_p2 = scmp.lt.s32.totalorder %s873_s15, 3  ;;  %s875_s21 = smov [#allocation5]  }
   0x9   : > { %s132_s22 = sshll.u32 %s875_s21, 4  ;;  %s144_s25 = sshll.u32 %s1064_s2, 4  ;;  %s133_s22 = int_to_ptr.vmem [resolvable:$true] %s132_s22  ;;  %s145_s25 = int_to_ptr.hbm [resolvable:$true] %s144_s25 }
   0xa   : > { %p928_p3 = pnand %p625_p0, %p119_p2  ;;  %s876_s26 = smov [#allocation7]  }
   0xb   : > { %s146_s27 = sshll.u32 %s876_s26, 4  ;;  %s877_s28 = smov 256   ;;  %s147_s27 = int_to_ptr.vmem [resolvable:$true] %s146_s27 }
   0xc   : > { %p656_p4 = pneg %p928_p3  ;;  %s878_s29 = smov 16  }
   0xd   : > { %s624_s30 = sadd.s32 4294967294, %s873_s15   ;;  %s942_s4 = sadd.s32 1, %s873_s15  }
   0xe   : > { %p657_p6 = pnand %p656_p4, %p41_p1  ;;  %s24_s5 = ssub.s32 %s873_s15, %s942_s4 }
   0xf   : > { %s27_s6 = sadd.s32 1, %s869_s14  ;;  %p25_p7 = scmp.eq.s32.totalorder %s24_s5, 0 }
  0x10   : > { %659 = dma.hbm_to_vmem [thread:$0]  (!%p657_p6), %s131_s18, 8192, %s133_s22, [#allocation6], %s877_s28, %s877_s28, %s878_s29  }
  0x11   : > { %662 = dma.hbm_to_vmem [thread:$0]  (!%p657_p6), %s145_s25, 8192, %s147_s27, [#allocation6], %s877_s28, %s877_s28, %s878_s29  }
  0x12   : > { %p34_p8 = scmp.ne.s32.totalorder %s869_s14, %s865_s13  ;;  %p35_p9 = scmp.eq.s32.totalorder %s873_s15, 0 }
  0x13   : > { %p40_p10 = scmp.ne.s32.totalorder %s865_s13, %s861_s12  ;;  %p106_p13 = scmp.eq.s32.totalorder %s923_s19, 1 }
  0x14   : > { %s953_s7 = scalar_select %p25_p7, %s869_s14, %s27_s6  }
  0x15   : > { %p955_p11 = por %p35_p9, %p34_p8  ;;  %p961_p12 = por %p41_p1, %p40_p10 }
  0x16   : > { %p112_p0 = scmp.eq.s32.totalorder %s624_s30, 1  ;;  %p673_p2 = scmp.lt.s32.totalorder %s873_s15, 2 }
  0x17   : > { %s160_s10 = sand.u32 1, %s869_s14   ;;  %p968_p4 = por %p106_p13, %p34_p8 }
  0x18   : > { %p972_p6 = por %p112_p0, %p40_p10  ;;  %s629_s17 = sshll.u32 %s160_s10, 4 }
  0x19   : > { %s642_s18 = sshll.u32 %s873_s15, 4  ;;  %s164_s24 = scalar_lea.vmem [#allocation2], %s629_s17 }
  0x1a   : > { %s169_s23 = scalar_lea.hbm %s1062_s0, %s642_s18  ;;  %s173_s25 = sshll.u32 %s164_s24, 4  ;;  %s174_s25 = int_to_ptr.vmem [resolvable:$true] %s173_s25 }
  0x1b   : > { %s171_s26 = sshll.u32 %s169_s23, 4  ;;  %p982_p7 = pnand %p673_p2, %p955_p11  ;;  %s172_s26 = int_to_ptr.hbm [resolvable:$true] %s171_s26 }
  0x1c   : > { %s161_s28 = scalar_lea.sflag [#allocation3], %s160_s10  ;;  %s773_s29 = sshra.s32 %s172_s26, 4  ;;  %s774_s29 = int_to_ptr.hbm [resolvable:$true] %s773_s29 }
  0x1d   : > { %s775_s30 = scalar_lea.hbm %s774_s29, 16  ;;  %p777_p9 = pneg %p982_p7 }
  0x1e   : > { %p776_p8 = scmp.ne.s32.totalorder %s774_s29, %s775_s30  ;;  %s780_s17 = scalar_lea.hbm %s1062_s0, 32 }
  0x1f   : > { %p781_p11 = scmp.lt.s32.totalorder %s774_s29, %s1062_s0  ;;  %p782_p0 = scmp.lt.s32.totalorder %s780_s17, %s775_s30 }
  0x20   : > { %p778_p10 = pnand %p777_p9, %p776_p8 }
  0x21   : > { %p783_p2 = por %p782_p0, %p781_p11 }
  0x22   : > { %p779_p13 = pneg %p778_p10 }
  0x24   : > { %p784_p5 = pnand %p783_p2, %p779_p13 }
  0x26   : > { %787 = shalt.err (!%p784_p5)
}
  0x27   : > { %666 = dma.hbm_to_vmem [thread:$0]  (!%p982_p7), %s172_s26, 256, %s174_s25, %s161_s28  }
  0x28   : > { %182 = sbr.rel (%p928_p3) target bundleno = 356 (0x164), region = 32  ;;  %s999_s10 = sand.u32 (!%p928_p3), 1, %s865_s13  }
  0x29   : > { %s633_s21 = sshll.u32 (!%p928_p3), %s999_s10, 4  ;;  %s185_s22 = scalar_lea.sflag (!%p928_p3), [#allocation3], %s999_s10 }
  0x2a   : > { %s1005_s23 = scalar_lea.vmem (!%p928_p3), [#allocation2], %s633_s21 }
  0x2d   : > { %848 = dma.done.wait (%p961_p12), %s185_s22, 256  }
  0x2e   : > { %850 = vsyncadd (%p961_p12), %s185_s22, 4294967040 }
  0x2f   : > { %852 = dma.done.wait (%p41_p1), [#allocation6], 16384  }
  0x30   : > { %854 = vsyncadd (%p41_p1), [#allocation6], 4294950912  ;;  %v253_v0 = vld [vmem:[#allocation5 + $0xf8] sm:$0xff]  ;;  %v251_v2 = vld [vmem:[#allocation5 + $0xe8] sm:$0xff]  ;;  %s643_s20 = sshll.u32 %s923_s19, 4  ;;  %s221_s26 = scalar_lea.vmem [#allocation8], %s633_s21 }
  0x31   : > { %v285_v1 = vld [vmem:[#allocation5 + $0x1f8] sm:$0xff]  ;;  %392 = vmatpush.msra.mxu2 %v253_v0  ;;  %v283_v3 = vld [vmem:[#allocation5 + $0x1e8] sm:$0xff]  ;;  %v252_v6 = vld [vmem:[#allocation5 + $0xf0] sm:$0xff]  ;;  %s530_s25 = scalar_lea.hbm %s1065_s3, %s643_s20  ;;  %s532_s27 = sshll.u32 %s221_s26, 4  ;;  %s533_s27 = int_to_ptr.vmem [resolvable:$true] %s532_s27 }
  0x32   : > { %412 = vmatpush.msra.mxu3 %v285_v1  ;;  %v249_v4 = vld [vmem:[#allocation5 + $0xd8] sm:$0xff]  ;;  %v284_v7 = vld [vmem:[#allocation5 + $0x1f0] sm:$0xff]  ;;  %v250_v8 = vld [vmem:[#allocation5 + $0xe0] sm:$0xff]  ;;  %352 = vmatpush.msra.mxu0 %v252_v6  ;;  %s534_s28 = sshll.u32 %s530_s25, 4  ;;  %s519_s19 = scalar_lea.sflag [#allocation4], %s999_s10  ;;  %s535_s28 = int_to_ptr.hbm [resolvable:$true] %s534_s28 }
  0x33   : > { %v281_v5 = vld [vmem:[#allocation5 + $0x1d8] sm:$0xff]  ;;  %393 = vmatpush.msra.mxu2 %v251_v2  ;;  %v282_v9 = vld [vmem:[#allocation5 + $0x1e0] sm:$0xff]  ;;  %372 = vmatpush.msra.mxu1 %v284_v7  ;;  %v247_v10 = vld [vmem:[#allocation5 + $0xc8] sm:$0xff]  ;;  %s817_s29 = sshra.s32 %s535_s28, 4  ;;  %s823_s17 = scalar_lea.hbm %s1065_s3, 32  ;;  %s818_s29 = int_to_ptr.hbm [resolvable:$true] %s817_s29 }
  0x34   : > { %413 = vmatpush.msra.mxu3 %v283_v3  ;;  %v279_v11 = vld [vmem:[#allocation5 + $0x1c8] sm:$0xff]  ;;  %v248_v12 = vld [vmem:[#allocation5 + $0xd0] sm:$0xff]  ;;  %353 = vmatpush.msra.mxu0 %v250_v8  ;;  %v245_v14 = vld [vmem:[#allocation5 + $0xb8] sm:$0xff]  ;;  %s819_s30 = scalar_lea.hbm %s818_s29, 16  ;;  %p824_p12 = scmp.lt.s32.totalorder %s818_s29, %s1065_s3 }
  0x35   : > { %394 = vmatpush.msra.mxu2 %v249_v4  ;;  %v280_v13 = vld [vmem:[#allocation5 + $0x1d0] sm:$0xff]  ;;  %373 = vmatpush.msra.mxu1 %v282_v9  ;;  %v277_v15 = vld [vmem:[#allocation5 + $0x1b8] sm:$0xff]  ;;  %v246_v16 = vld [vmem:[#allocation5 + $0xc0] sm:$0xff]  ;;  %p820_p1 = scmp.ne.s32.totalorder %s818_s29, %s819_s30  ;;  %p825_p7 = scmp.lt.s32.totalorder %s823_s17, %s819_s30 }
  0x36   : > { %414 = vmatpush.msra.mxu3 %v281_v5  ;;  %v278_v17 = vld [vmem:[#allocation5 + $0x1c0] sm:$0xff]  ;;  %354 = vmatpush.msra.mxu0 %v248_v12  ;;  %v243_v18 = vld [vmem:[#allocation5 + $0xa8] sm:$0xff]  ;;  %v244_v20 = vld [vmem:[#allocation5 + $0xb0] sm:$0xff] }
  0x37   : > { %395 = vmatpush.msra.mxu2 %v247_v10  ;;  %374 = vmatpush.msra.mxu1 %v280_v13  ;;  %v275_v19 = vld [vmem:[#allocation5 + $0x1a8] sm:$0xff]  ;;  %v276_v21 = vld [vmem:[#allocation5 + $0x1b0] sm:$0xff]  ;;  %v241_v22 = vld [vmem:[#allocation5 + $0x98] sm:$0xff]  ;;  %p821_p3 = pnand %p820_p1, %p968_p4  ;;  %p826_p8 = por %p825_p7, %p824_p12 }
  0x38   : > { %415 = vmatpush.msra.mxu3 %v279_v11  ;;  %355 = vmatpush.msra.mxu0 %v246_v16  ;;  %v273_v23 = vld [vmem:[#allocation5 + $0x198] sm:$0xff]  ;;  %v242_v24 = vld [vmem:[#allocation5 + $0xa0] sm:$0xff]  ;;  %v239_v26 = vld [vmem:[#allocation5 + $0x88] sm:$0xff] }
  0x39   : > { %396 = vmatpush.msra.mxu2 %v245_v14  ;;  %375 = vmatpush.msra.mxu1 %v278_v17  ;;  %v274_v25 = vld [vmem:[#allocation5 + $0x1a0] sm:$0xff]  ;;  %v271_v27 = vld [vmem:[#allocation5 + $0x188] sm:$0xff]  ;;  %v240_v28 = vld [vmem:[#allocation5 + $0x90] sm:$0xff]  ;;  %p822_p5 = pneg %p821_p3 }
  0x3a   : > { %416 = vmatpush.msra.mxu3 %v277_v15  ;;  %356 = vmatpush.msra.mxu0 %v244_v20  ;;  %v272_v29 = vld [vmem:[#allocation5 + $0x190] sm:$0xff]  ;;  %v237_v30 = vld [vmem:[#allocation5 + $0x78] sm:$0xff]  ;;  %v238_v32 = vld [vmem:[#allocation5 + $0x80] sm:$0xff] }
  0x3b   : > { %397 = vmatpush.msra.mxu2 %v243_v18  ;;  %376 = vmatpush.msra.mxu1 %v276_v21  ;;  %v269_v31 = vld [vmem:[#allocation5 + $0x178] sm:$0xff]  ;;  %v270_v33 = vld [vmem:[#allocation5 + $0x180] sm:$0xff]  ;;  %v235_v34 = vld [vmem:[#allocation5 + $0x68] sm:$0xff]  ;;  %p827_p9 = pnand %p826_p8, %p822_p5 }
  0x3c   : > { %417 = vmatpush.msra.mxu3 %v275_v19  ;;  %357 = vmatpush.msra.mxu0 %v242_v24  ;;  %v267_v35 = vld [vmem:[#allocation5 + $0x168] sm:$0xff]  ;;  %v236_v36 = vld [vmem:[#allocation5 + $0x70] sm:$0xff]  ;;  %v233_v38 = vld [vmem:[#allocation5 + $0x58] sm:$0xff] }
  0x3d   : > { %398 = vmatpush.msra.mxu2 %v241_v22  ;;  %377 = vmatpush.msra.mxu1 %v274_v25  ;;  %v268_v37 = vld [vmem:[#allocation5 + $0x170] sm:$0xff]  ;;  %v265_v39 = vld [vmem:[#allocation5 + $0x158] sm:$0xff]  ;;  %v234_v40 = vld [vmem:[#allocation5 + $0x60] sm:$0xff] }
  0x3e   : > { %418 = vmatpush.msra.mxu3 %v273_v23  ;;  %358 = vmatpush.msra.mxu0 %v240_v28  ;;  %v266_v41 = vld [vmem:[#allocation5 + $0x160] sm:$0xff]  ;;  %v231_v42 = vld [vmem:[#allocation5 + $0x48] sm:$0xff]  ;;  %v232_v44 = vld [vmem:[#allocation5 + $0x50] sm:$0xff] }
  0x3f   : > { %399 = vmatpush.msra.mxu2 %v239_v26  ;;  %378 = vmatpush.msra.mxu1 %v272_v29  ;;  %v263_v43 = vld [vmem:[#allocation5 + $0x148] sm:$0xff]  ;;  %v264_v45 = vld [vmem:[#allocation5 + $0x150] sm:$0xff]  ;;  %v229_v46 = vld [vmem:[#allocation5 + $0x38] sm:$0xff] }
  0x40   : > { %419 = vmatpush.msra.mxu3 %v271_v27  ;;  %359 = vmatpush.msra.mxu0 %v238_v32  ;;  %v261_v47 = vld [vmem:[#allocation5 + $0x138] sm:$0xff]  ;;  %v230_v48 = vld [vmem:[#allocation5 + $0x40] sm:$0xff]  ;;  %v227_v50 = vld [vmem:[#allocation5 + $0x28] sm:$0xff] }
  0x41   : > { %400 = vmatpush.msra.mxu2 %v237_v30  ;;  %379 = vmatpush.msra.mxu1 %v270_v33  ;;  %v262_v49 = vld [vmem:[#allocation5 + $0x140] sm:$0xff]  ;;  %v259_v51 = vld [vmem:[#allocation5 + $0x128] sm:$0xff]  ;;  %v228_v52 = vld [vmem:[#allocation5 + $0x30] sm:$0xff] }
  0x42   : > { %420 = vmatpush.msra.mxu3 %v269_v31  ;;  %360 = vmatpush.msra.mxu0 %v236_v36  ;;  %v260_v53 = vld [vmem:[#allocation5 + $0x130] sm:$0xff]  ;;  %v225_v54 = vld [vmem:[#allocation5 + $0x18] sm:$0xff]  ;;  %v226_v56 = vld [vmem:[#allocation5 + $0x20] sm:$0xff] }
  0x43   : > { %401 = vmatpush.msra.mxu2 %v235_v34  ;;  %380 = vmatpush.msra.mxu1 %v268_v37  ;;  %v257_v55 = vld [vmem:[#allocation5 + $0x118] sm:$0xff]  ;;  %v258_v57 = vld [vmem:[#allocation5 + $0x120] sm:$0xff]  ;;  %v223_v58 = vld [vmem:[#allocation5 + $0x8] sm:$0xff] }
  0x44   : > { %421 = vmatpush.msra.mxu3 %v267_v35  ;;  %361 = vmatpush.msra.mxu0 %v234_v40  ;;  %v255_v59 = vld [vmem:[#allocation5 + $0x108] sm:$0xff]  ;;  %v1016_v60 = vld [vmem:[%s1005_s23] sm:$0xff]  ;;  %v317_v0 = vld [vmem:[#allocation7 + $0xf8] sm:$0xff] }
  0x45   : > { %402 = vmatpush.msra.mxu2 %v233_v38  ;;  %381 = vmatpush.msra.mxu1 %v266_v41  ;;  %v1019_v61 = vld [vmem:[%s1005_s23 + $0x8] sm:$0xff]  ;;  %v224_v62 = vld [vmem:[#allocation5 + $0x10] sm:$0xff]  ;;  %v222_v2 = vld [vmem:[#allocation5] sm:$0xff] }
  0x46   : > { %422 = vmatpush.msra.mxu3 %v265_v39  ;;  %362 = vmatpush.msra.mxu0 %v232_v44  ;;  %v256_v63 = vld [vmem:[#allocation5 + $0x110] sm:$0xff]  ;;  %v349_v1 = vld [vmem:[#allocation7 + $0x1f8] sm:$0xff]  ;;  %v254_v3 = vld [vmem:[#allocation5 + $0x100] sm:$0xff] }
  0x47   : > { %403 = vmatpush.msra.mxu2 %v231_v42  ;;  %382 = vmatpush.msra.mxu1 %v264_v45  ;;  %v316_v4 = vld [vmem:[#allocation7 + $0xf0] sm:$0xff]  ;;  %v315_v6 = vld [vmem:[#allocation7 + $0xe8] sm:$0xff]  ;;  %v314_v8 = vld [vmem:[#allocation7 + $0xe0] sm:$0xff] }
  0x48   : > { %423 = vmatpush.msra.mxu3 %v263_v43  ;;  %363 = vmatpush.msra.mxu0 %v230_v48  ;;  %v348_v5 = vld [vmem:[#allocation7 + $0x1f0] sm:$0xff]  ;;  %v347_v7 = vld [vmem:[#allocation7 + $0x1e8] sm:$0xff]  ;;  %v346_v9 = vld [vmem:[#allocation7 + $0x1e0] sm:$0xff] }
  0x49   : > { %404 = vmatpush.msra.mxu2 %v229_v46  ;;  %383 = vmatpush.msra.mxu1 %v262_v49  ;;  %v313_v10 = vld [vmem:[#allocation7 + $0xd8] sm:$0xff]  ;;  %v312_v12 = vld [vmem:[#allocation7 + $0xd0] sm:$0xff]  ;;  %v311_v14 = vld [vmem:[#allocation7 + $0xc8] sm:$0xff] }
  0x4a   : > { %424 = vmatpush.msra.mxu3 %v261_v47  ;;  %364 = vmatpush.msra.mxu0 %v228_v52  ;;  %v345_v11 = vld [vmem:[#allocation7 + $0x1d8] sm:$0xff]  ;;  %v344_v13 = vld [vmem:[#allocation7 + $0x1d0] sm:$0xff]  ;;  %v343_v15 = vld [vmem:[#allocation7 + $0x1c8] sm:$0xff] }
  0x4b   : > { %405 = vmatpush.msra.mxu2 %v227_v50  ;;  %384 = vmatpush.msra.mxu1 %v260_v53  ;;  %v310_v16 = vld [vmem:[#allocation7 + $0xc0] sm:$0xff]  ;;  %v309_v18 = vld [vmem:[#allocation7 + $0xb8] sm:$0xff]  ;;  %v308_v20 = vld [vmem:[#allocation7 + $0xb0] sm:$0xff] }
  0x4c   : > { %425 = vmatpush.msra.mxu3 %v259_v51  ;;  %365 = vmatpush.msra.mxu0 %v226_v56  ;;  %v342_v17 = vld [vmem:[#allocation7 + $0x1c0] sm:$0xff]  ;;  %v341_v19 = vld [vmem:[#allocation7 + $0x1b8] sm:$0xff]  ;;  %v340_v21 = vld [vmem:[#allocation7 + $0x1b0] sm:$0xff] }
  0x4d   : > { %406 = vmatpush.msra.mxu2 %v225_v54  ;;  %385 = vmatpush.msra.mxu1 %v258_v57  ;;  %v307_v22 = vld [vmem:[#allocation7 + $0xa8] sm:$0xff]  ;;  %v306_v24 = vld [vmem:[#allocation7 + $0xa0] sm:$0xff]  ;;  %v305_v26 = vld [vmem:[#allocation7 + $0x98] sm:$0xff] }
  0x4e   : > { %426 = vmatpush.msra.mxu3 %v257_v55  ;;  %366 = vmatpush.msra.mxu0 %v224_v62  ;;  %v339_v23 = vld [vmem:[#allocation7 + $0x1a8] sm:$0xff]  ;;  %v338_v25 = vld [vmem:[#allocation7 + $0x1a0] sm:$0xff]  ;;  %v337_v27 = vld [vmem:[#allocation7 + $0x198] sm:$0xff] }
  0x4f   : > { %407 = vmatpush.msra.mxu2 %v223_v58  ;;  %386 = vmatpush.msra.mxu1 %v256_v63  ;;  %v304_v28 = vld [vmem:[#allocation7 + $0x90] sm:$0xff]  ;;  %v303_v30 = vld [vmem:[#allocation7 + $0x88] sm:$0xff]  ;;  %v302_v32 = vld [vmem:[#allocation7 + $0x80] sm:$0xff] }
  0x50   : > { %427 = vmatpush.msra.mxu3 %v255_v59  ;;  %408 = vmatmul.f32.vlgmr.msra.gmra.mxu2 %v1016_v60  ;;  %v336_v29 = vld [vmem:[#allocation7 + $0x190] sm:$0xff]  ;;  %v335_v31 = vld [vmem:[#allocation7 + $0x188] sm:$0xff]  ;;  %v334_v33 = vld [vmem:[#allocation7 + $0x180] sm:$0xff] }
  0x51   : > { %428 = vmatmul.f32.vlgmr.msra.gmra.mxu3 %v1019_v61  ;;  %474 = vmatpush.msrb.mxu2 %v317_v0  ;;  %v301_v34 = vld [vmem:[#allocation7 + $0x78] sm:$0xff]  ;;  %v300_v36 = vld [vmem:[#allocation7 + $0x70] sm:$0xff]  ;;  %v299_v38 = vld [vmem:[#allocation7 + $0x68] sm:$0xff] }
  0x52   : > { %494 = vmatpush.msrb.mxu3 %v349_v1  ;;  %367 = vmatpush.msra.mxu0 %v222_v2  ;;  %v333_v35 = vld [vmem:[#allocation7 + $0x178] sm:$0xff]  ;;  %v332_v37 = vld [vmem:[#allocation7 + $0x170] sm:$0xff]  ;;  %v331_v39 = vld [vmem:[#allocation7 + $0x168] sm:$0xff] }
  0x53   : > { %387 = vmatpush.msra.mxu1 %v254_v3  ;;  %368 = vmatmul.f32.vlgmr.msra.gmra.mxu0 %v1016_v60  ;;  %v298_v40 = vld [vmem:[#allocation7 + $0x60] sm:$0xff]  ;;  %v297_v42 = vld [vmem:[#allocation7 + $0x58] sm:$0xff]  ;;  %v296_v44 = vld [vmem:[#allocation7 + $0x50] sm:$0xff] }
  0x54   : > { %388 = vmatmul.f32.vlgmr.msra.gmra.mxu1 %v1019_v61  ;;  %434 = vmatpush.msrb.mxu0 %v316_v4  ;;  %v330_v41 = vld [vmem:[#allocation7 + $0x160] sm:$0xff]  ;;  %v329_v43 = vld [vmem:[#allocation7 + $0x158] sm:$0xff]  ;;  %v328_v45 = vld [vmem:[#allocation7 + $0x150] sm:$0xff] }
  0x55   : > { %454 = vmatpush.msrb.mxu1 %v348_v5  ;;  %475 = vmatpush.msrb.mxu2 %v315_v6  ;;  %v295_v46 = vld [vmem:[#allocation7 + $0x48] sm:$0xff]  ;;  %v294_v48 = vld [vmem:[#allocation7 + $0x40] sm:$0xff]  ;;  %v293_v50 = vld [vmem:[#allocation7 + $0x38] sm:$0xff] }
  0x56   : > { %495 = vmatpush.msrb.mxu3 %v347_v7  ;;  %435 = vmatpush.msrb.mxu0 %v314_v8  ;;  %v327_v47 = vld [vmem:[#allocation7 + $0x148] sm:$0xff]  ;;  %v326_v49 = vld [vmem:[#allocation7 + $0x140] sm:$0xff]  ;;  %v325_v51 = vld [vmem:[#allocation7 + $0x138] sm:$0xff] }
  0x57   : > { %455 = vmatpush.msrb.mxu1 %v346_v9  ;;  %476 = vmatpush.msrb.mxu2 %v313_v10  ;;  %v292_v52 = vld [vmem:[#allocation7 + $0x30] sm:$0xff]  ;;  %v290_v54 = vld [vmem:[#allocation7 + $0x20] sm:$0xff]  ;;  %v291_v56 = vld [vmem:[#allocation7 + $0x28] sm:$0xff] }
  0x58   : > { %496 = vmatpush.msrb.mxu3 %v345_v11  ;;  %436 = vmatpush.msrb.mxu0 %v312_v12  ;;  %v324_v53 = vld [vmem:[#allocation7 + $0x130] sm:$0xff]  ;;  %v322_v55 = vld [vmem:[#allocation7 + $0x120] sm:$0xff]  ;;  %v323_v57 = vld [vmem:[#allocation7 + $0x128] sm:$0xff] }
  0x59   : > { %456 = vmatpush.msrb.mxu1 %v344_v13  ;;  %477 = vmatpush.msrb.mxu2 %v311_v14  ;;  %v288_v58 = vld [vmem:[#allocation7 + $0x10] sm:$0xff]  ;;  %v289_v62 = vld [vmem:[#allocation7 + $0x18] sm:$0xff]  ;;  %v286_v0 = vld [vmem:[#allocation7] sm:$0xff] }
  0x5a   : > { %497 = vmatpush.msrb.mxu3 %v343_v15  ;;  %437 = vmatpush.msrb.mxu0 %v310_v16  ;;  %v320_v59 = vld [vmem:[#allocation7 + $0x110] sm:$0xff]  ;;  %v321_v63 = vld [vmem:[#allocation7 + $0x118] sm:$0xff]  ;;  %v318_v1 = vld [vmem:[#allocation7 + $0x100] sm:$0xff] }
  0x5b   : > { %457 = vmatpush.msrb.mxu1 %v342_v17  ;;  %478 = vmatpush.msrb.mxu2 %v309_v18  ;;  %v287_v2 = vld [vmem:[#allocation7 + $0x8] sm:$0xff] }
  0x5c   : > { %498 = vmatpush.msrb.mxu3 %v341_v19  ;;  %438 = vmatpush.msrb.mxu0 %v308_v20  ;;  %v319_v3 = vld [vmem:[#allocation7 + $0x108] sm:$0xff] }
  0x5d   : > { %458 = vmatpush.msrb.mxu1 %v340_v21  ;;  %479 = vmatpush.msrb.mxu2 %v307_v22 }
  0x5e   : > { %499 = vmatpush.msrb.mxu3 %v339_v23  ;;  %439 = vmatpush.msrb.mxu0 %v306_v24 }
  0x5f   : > { %459 = vmatpush.msrb.mxu1 %v338_v25  ;;  %480 = vmatpush.msrb.mxu2 %v305_v26 }
  0x60   : > { %500 = vmatpush.msrb.mxu3 %v337_v27  ;;  %440 = vmatpush.msrb.mxu0 %v304_v28 }
  0x61   : > { %460 = vmatpush.msrb.mxu1 %v336_v29  ;;  %481 = vmatpush.msrb.mxu2 %v303_v30 }
  0x62   : > { %501 = vmatpush.msrb.mxu3 %v335_v31  ;;  %441 = vmatpush.msrb.mxu0 %v302_v32 }
  0x63   : > { %461 = vmatpush.msrb.mxu1 %v334_v33  ;;  %482 = vmatpush.msrb.mxu2 %v301_v34 }
  0x64   : > { %502 = vmatpush.msrb.mxu3 %v333_v35  ;;  %442 = vmatpush.msrb.mxu0 %v300_v36 }
  0x65   : > { %462 = vmatpush.msrb.mxu1 %v332_v37  ;;  %483 = vmatpush.msrb.mxu2 %v299_v38 }
  0x66   : > { %503 = vmatpush.msrb.mxu3 %v331_v39  ;;  %443 = vmatpush.msrb.mxu0 %v298_v40 }
  0x67   : > { %463 = vmatpush.msrb.mxu1 %v330_v41  ;;  %484 = vmatpush.msrb.mxu2 %v297_v42 }
  0x68   : > { %504 = vmatpush.msrb.mxu3 %v329_v43  ;;  %444 = vmatpush.msrb.mxu0 %v296_v44 }
  0x69   : > { %464 = vmatpush.msrb.mxu1 %v328_v45  ;;  %485 = vmatpush.msrb.mxu2 %v295_v46 }
  0x6a   : > { %505 = vmatpush.msrb.mxu3 %v327_v47  ;;  %445 = vmatpush.msrb.mxu0 %v294_v48 }
  0x6b   : > { %465 = vmatpush.msrb.mxu1 %v326_v49  ;;  %486 = vmatpush.msrb.mxu2 %v293_v50 }
  0x6c   : > { %506 = vmatpush.msrb.mxu3 %v325_v51  ;;  %446 = vmatpush.msrb.mxu0 %v292_v52 }
  0x6d   : > { %466 = vmatpush.msrb.mxu1 %v324_v53  ;;  %487 = vmatpush.msrb.mxu2 %v291_v56 }
  0x6e   : > { %447 = vmatpush.msrb.mxu0 %v290_v54  ;;  %507 = vmatpush.msrb.mxu3 %v323_v57 }
  0x6f   : > { %467 = vmatpush.msrb.mxu1 %v322_v55  ;;  %488 = vmatpush.msrb.mxu2 %v289_v62 }
  0x70   : > { %448 = vmatpush.msrb.mxu0 %v288_v58  ;;  %508 = vmatpush.msrb.mxu3 %v321_v63 }
  0x71   : > { %468 = vmatpush.msrb.mxu1 %v320_v59  ;;  %489 = vmatpush.msrb.mxu2 %v287_v2 }
  0x72   : > { %449 = vmatpush.msrb.mxu0 %v286_v0  ;;  %509 = vmatpush.msrb.mxu3 %v319_v3 }
  0x73   : > { %469 = vmatpush.msrb.mxu1 %v318_v1 }
  0xd0   : > { %v369_v4 = vpop.f32.mrf.mxu0 }
  0xd1   : > { %v389_v5 = vpop.f32.mrf.mxu1 }
  0xd2   : > { %v390_v6 = vadd.f32 %v389_v5, %v369_v4 }
  0xd3   : > { %v409_v7 = vpop.f32.mrf.mxu2 }
  0xd4   : > { %v429_v8 = vpop.f32.mrf.mxu3  ;;  %v432_v9 = vadd.f32 %v390_v6, %v1016_v60 }
  0xd5   : > { %v430_v10 = vadd.f32 %v429_v8, %v409_v7 }
  0xd6   : > { %450 = vmatmul.f32.vlgmr.msrb.gmra.mxu0 %v432_v9  ;;  %490 = vmatmul.f32.vlgmr.msrb.gmra.mxu2 %v432_v9 }
  0xd7   : > { %v433_v11 = vadd.f32 %v430_v10, %v1019_v61 }
  0xd9   : > { %470 = vmatmul.f32.vlgmr.msrb.gmra.mxu1 %v433_v11  ;;  %510 = vmatmul.f32.vlgmr.msrb.gmra.mxu3 %v433_v11 }
 0x153   : > { %v451_v12 = vpop.f32.mrf.mxu0 }
 0x156   : > { %v471_v13 = vpop.f32.mrf.mxu1 }
 0x157   : > { %v472_v14 = vadd.f32 %v471_v13, %v451_v12 }
 0x159   : > { %v514_v15 = vadd.f32 %v472_v14, %v432_v9  ;;  %v491_v16 = vpop.f32.mrf.mxu2 }
 0x15b   : > { %516 = vst [vmem:[%s221_s26] sm:$0xff] %v514_v15 }
 0x15c   : > { %v511_v60 = vpop.f32.mrf.mxu3 }
 0x15d   : > { %v512_v61 = vadd.f32 %v511_v60, %v491_v16 }
 0x15f   : > { %v515_v17 = vadd.f32 %v512_v61, %v433_v11 }
 0x161   : > { %517 = vst [vmem:[%s221_s26 + $0x8] sm:$0xff] %v515_v17 }
 0x162   : > { %830 = shalt.err (!%p827_p9)
}
 0x163   : > { %654 = dma.vmem_to_hbm [thread:$0]  (%p968_p4), %s533_s27, 256, %s535_s28, %s519_s19  }
 0x164 PF: > { %s546_s10 = sand.u32 1, %s861_s12   ;;  %p1072_p10 = scmp.ge.s32.totalorder %s873_s15, 2 }
 0x165   : > { %s547_s21 = scalar_lea.sflag [#allocation4], %s546_s10 }
 0x166   : > { %p668_p13 = pnand %p1072_p10, %p972_p6 }
 0x168   : > { %p669_p11 = pneg %p668_p13 }
 0x16a   : > { %856 = dma.done.wait (%p669_p11), %s547_s21, 256  }
 0x16b   : > { %858 = vsyncadd (%p669_p11), %s547_s21, 4294967040  ;;  %p17_p0 = scmp.ge.s32.totalorder %s942_s4, 4   ;;  %s1073_s12 = smov %s865_s13 }
 0x16c   : > { %s1074_s13 = smov %s869_s14  ;;  %s1075_s14 = smov %s953_s7 }
 0x16d   : > { %s1076_s15 = smov %s942_s4  ;;  %19 = sbr.rel (!%p17_p0) target bundleno = 6 (0x6), region = 85 }
 0x172   :  { %553 = vsyncpa [#allocation3], 1 }
 0x173   :  { %555 = vsyncpa [#allocation3 + $0x1], 1 }
 0x174   :  { %556 = vsyncpa [#allocation6], 1 }
 0x175   :  { %557 = vsyncpa [#allocation4], 1 }
 0x176   :  { %559 = vsyncpa [#allocation4 + $0x1], 1 }

</bundles_post_ra>
